<compile_context>
chip_gen: v7x
topology: tpu7x:2x2x1
jax: 0.10.0
libtpu: 0.0.40
codegen_flags: <defaults>
</compile_context>

<pallas_src>
import jax
import jax.numpy as jnp
from jax.experimental import pallas as pl
from jax.experimental.pallas import tpu as pltpu


def _reverse_rnn_kernel(x_ref, h0_ref, wih_ref, whh_ref, b_ref, out_ref,
                        xw_ref, h_scratch):
    """One grid step = (batch tile b, time chunk c); chunk walked in reverse.

    x_ref    : (TC, BT, Ip)     input chunk (matmul dtype: bf16 or f32)
    h0_ref   : (BT, Hp) f32     initial hidden state for this batch tile
    wih_ref  : (Ip, Hp)         W_ih.T  (whole array, single VMEM copy)
    whh_ref  : (Hp, Hp)         W_hh.T  (whole array, single VMEM copy)
    b_ref    : (1, Hp) f32      b_ih + b_hh (single VMEM copy)
    out_ref  : (TC, BT, Hp)     stacked-output chunk
    xw_ref   : (TC, BT, Hp) f32 scratch: batched x-projection (+ bias)
    h_scratch: (BT, Hp) f32     hidden-state carry across time chunks
    """
    c = pl.program_id(1)                       # time-chunk index (reverse walk)
    tc, bt, ip = x_ref.shape
    hp = out_ref.shape[-1]

    # First time chunk of each batch tile: load the initial state.
    @pl.when(c == 0)
    def _():
        h_scratch[...] = h0_ref[...].astype(jnp.float32)

    # ---- Time-invariant input projection, hoisted out of the serial loop:
    # one MXU push with M = TC*BT rows instead of TC pushes with M = BT rows.
    # Bias is folded in here once per chunk (no per-step broadcast).
    x2d = x_ref[...].reshape(tc * bt, ip)
    xw = jnp.dot(x2d, wih_ref[...], preferred_element_type=jnp.float32)
    xw = xw + b_ref[...]
    xw_ref[...] = xw.reshape(tc, bt, hp)

    # ---- Serial reverse walk: only the small recurrent dot + tanh remain.
    whh = whh_ref[...]                         # hoisted load (once per chunk)
    mm_dtype = whh.dtype                       # bf16 (MXU-native) or f32
    h = h_scratch[...]
    for k in range(tc):                        # fully unrolled; body is tiny
        t = tc - 1 - k
        h = jnp.tanh(
            xw_ref[t]
            + jnp.dot(h.astype(mm_dtype), whh,
                      preferred_element_type=jnp.float32))
        out_ref[t] = h.astype(out_ref.dtype)
    h_scratch[...] = h


def _round_up(x, m):
    return ((x + m - 1) // m) * m


def reverse_layer(inp, state, w_ih, w_hh, b_ih, b_hh, *,
                  time_chunk=None, max_time_chunk=32, use_bf16_matmul=True):
    """Pallas implementation of ReverseLayer.forward with an RNN(tanh) cell.

    inp:   (T, B, I) float32
    state: (B, H)    float32
    w_ih:  (H, I), w_hh: (H, H), b_ih/b_hh: (H,)
    returns (outputs (T, B, H), final_state (B, H))
    """
    T, B, I = inp.shape
    H = state.shape[1]
    f32 = jnp.float32
    mm_dtype = jnp.bfloat16 if use_bf16_matmul else f32
    mm_bytes = jnp.dtype(mm_dtype).itemsize
    out_dtype = inp.dtype
    out_bytes = jnp.dtype(out_dtype).itemsize

    # --- pad to lane/sublane-dense tiles: (sublane=8, lane=128) -------------
    Bp = _round_up(B, 8)
    Ip = _round_up(I, 128)
    Hp = _round_up(H, 128)

    # --- batch tiling: 2 independent tiles -> 'parallel' grid axis feeds both
    #     TensorCores on v7x (harmless no-op on single-core v5e/v6e).
    n_bt = 2 if (Bp >= 16 and Bp % 16 == 0) else 1
    BT = Bp // n_bt

    # --- generation-aware VMEM budgeting (v5e/v6e ~128 MiB, v7x 64 MiB/core) -
    try:
        vmem_cap = int(pltpu.get_tpu_info().vmem_capacity_bytes)
    except Exception:
        vmem_cap = 64 * 1024 * 1024           # conservative (v7x per-core)
    budget = int(min(vmem_cap // 2, 48 * 1024 * 1024))

    weight_bytes = (Ip * Hp + Hp * Hp) * mm_bytes + Hp * 4  # single VMEM copy
    fixed_bytes = weight_bytes + 3 * BT * Hp * 4            # h carry + h0 (2 bufs)
    per_step_bytes = BT * (2 * Ip * mm_bytes                # x (double-buffered)
                           + 2 * Hp * out_bytes             # out (double-buffered)
                           + Hp * 4)                        # xw scratch

    if time_chunk is None:
        tc = int(max(1, min(T, max_time_chunk,
                            (budget - fixed_bytes) // per_step_bytes)))
    else:
        tc = int(min(time_chunk, T))
    nc = -(-T // tc)                 # cdiv
    T_pad = nc * tc
    pad = T_pad - T                  # front time-pad: padded steps run *last*
                                     # in the reverse walk and are sliced off.

    need = fixed_bytes + per_step_bytes * tc
    vmem_limit = int(min(int(vmem_cap * 0.8),
                         max(32 * 1024 * 1024, int(need * 1.5) + (2 << 20))))

    # --- operand prep: zero padding keeps the recurrence exact on the real
    #     block (padded input lanes / hidden lanes contribute nothing; padded
    #     output lanes stay exactly 0 since bias padding is 0 and tanh(0)=0).
    x_pad = jnp.zeros((T_pad, Bp, Ip), mm_dtype).at[pad:, :B, :I].set(
        inp.astype(mm_dtype))
    h0_pad = jnp.zeros((Bp, Hp), f32).at[:B, :H].set(state.astype(f32))
    wih_p = jnp.zeros((Ip, Hp), mm_dtype).at[:I, :H].set(w_ih.T.astype(mm_dtype))
    whh_p = jnp.zeros((Hp, Hp), mm_dtype).at[:H, :H].set(w_hh.T.astype(mm_dtype))
    bias = jnp.zeros((1, Hp), f32).at[0, :H].set((b_ih + b_hh).astype(f32))

    outputs_pad = pl.pallas_call(
        _reverse_rnn_kernel,
        out_shape=jax.ShapeDtypeStruct((T_pad, Bp, Hp), out_dtype),
        grid_spec=pltpu.PrefetchScalarGridSpec(
            num_scalar_prefetch=0,
            grid=(n_bt, nc),
            in_specs=[
                # x: walk the chunked time axis backwards; batch tile = b
                pl.BlockSpec((tc, BT, Ip), lambda b, c: (nc - 1 - c, b, 0)),
                # h0: per batch tile (tiny)
                pl.BlockSpec((BT, Hp), lambda b, c: (b, 0)),
                # Resident operands: single VMEM copy, no double-buffering.
                pl.BlockSpec(memory_space=pltpu.MemorySpace.VMEM),  # W_ih.T
                pl.BlockSpec(memory_space=pltpu.MemorySpace.VMEM),  # W_hh.T
                pl.BlockSpec(memory_space=pltpu.MemorySpace.VMEM),  # bias
            ],
            out_specs=pl.BlockSpec((tc, BT, Hp), lambda b, c: (nc - 1 - c, b, 0)),
            scratch_shapes=[
                pltpu.VMEM((tc, BT, Hp), jnp.float32),  # xw (pre-activation)
                pltpu.VMEM((BT, Hp), jnp.float32),      # hidden-state carry
            ],
        ),
        compiler_params=pltpu.CompilerParams(
            dimension_semantics=("parallel", "arbitrary"),
            vmem_limit_bytes=vmem_limit),
    )(x_pad, h0_pad, wih_p, whh_p, bias)

    outputs = outputs_pad[pad:, :B, :H]
    # PyTorch's returned final state is the same tensor as outputs[0].
    return outputs, outputs[0]


def reverse_layer_ref(inp, state, w_ih, w_hh, b_ih, b_hh):
    """Pure-JAX reference matching the PyTorch loop semantics."""
    T = inp.shape[0]
    outputs = []
    h = state
    for i in range(T):
        j = T - 1 - i
        h = jnp.tanh(inp[j] @ w_ih.T + b_ih + h @ w_hh.T + b_hh)
        outputs = [h] + outputs
    return jnp.stack(outputs), h


if __name__ == "__main__":
    def make_inputs(key, T, B, I, H):
        k1, k2, k3, k4, k5, k6 = jax.random.split(key, 6)
        inp = jax.random.normal(k1, (T, B, I), dtype=jnp.float32)
        state = jax.random.normal(k2, (B, H), dtype=jnp.float32)
        # RNNCell parameter shapes: W_ih (H, I), W_hh (H, H).
        w_ih = jax.random.normal(k3, (H, I), dtype=jnp.float32) * 0.1
        w_hh = jax.random.normal(k4, (H, H), dtype=jnp.float32) * 0.1
        b_ih = jax.random.normal(k5, (H,), dtype=jnp.float32) * 0.1
        b_hh = jax.random.normal(k6, (H,), dtype=jnp.float32) * 0.1
        return inp, state, w_ih, w_hh, b_ih, b_hh

    # 1) f32 MXU path, single time chunk: tight-tolerance correctness check.
    args = make_inputs(jax.random.PRNGKey(0), T=8, B=4, I=16, H=32)
    outputs, h_last = reverse_layer(*args, use_bf16_matmul=False)
    jax.block_until_ready((outputs, h_last))
    out_ref, h_ref = reverse_layer_ref(*args)
    assert jnp.allclose(outputs, out_ref, atol=2e-5, rtol=2e-5)
    assert jnp.allclose(h_last, h_ref, atol=2e-5, rtol=2e-5)

    # 2) bf16-operand MXU path (native on v6e/v7x), multi-chunk carry
    #    (T=12, time_chunk=4 -> 3 grid steps along the serial time axis).
    args2 = make_inputs(jax.random.PRNGKey(0), T=12, B=4, I=16, H=32)
    outputs2, h_last2 = reverse_layer(*args2, time_chunk=4)
    jax.block_until_ready((outputs2, h_last2))
    out_ref2, h_ref2 = reverse_layer_ref(*args2)
    assert jnp.allclose(outputs2, out_ref2, atol=3e-2, rtol=3e-2)
    assert jnp.allclose(h_last2, h_ref2, atol=3e-2, rtol=3e-2)

    # 3) Non-divisible T (front time-padding path) + two batch tiles
    #    (exercises the 'parallel' batch grid axis), f32 path, tight tolerance.
    args3 = make_inputs(jax.random.PRNGKey(0), T=7, B=16, I=16, H=32)
    outputs3, h_last3 = reverse_layer(*args3, time_chunk=4,
                                      use_bf16_matmul=False)
    jax.block_until_ready((outputs3, h_last3))
    out_ref3, h_ref3 = reverse_layer_ref(*args3)
    assert jnp.allclose(outputs3, out_ref3, atol=2e-5, rtol=2e-5)
    assert jnp.allclose(h_last3, h_ref3, atol=2e-5, rtol=2e-5)

    print("KERNEL_OK")
</pallas_src>

<mosaic_0001>
module attributes {stable_mosaic.version = 11 : i64} {
  func.func @_reverse_rnn_kernel(%arg0: i32, %arg1: i32, %arg2: memref<8x8x128xf32, #tpu.memory_space<vmem>>, %arg3: memref<8x128xf32, #tpu.memory_space<vmem>>, %arg4: memref<128x128xf32, #tpu.memory_space<vmem>>, %arg5: memref<128x128xf32, #tpu.memory_space<vmem>>, %arg6: memref<1x128xf32, #tpu.memory_space<vmem>>, %arg7: memref<8x8x128xf32, #tpu.memory_space<vmem>>, %arg8: memref<8x8x128xf32, #tpu.memory_space<vmem>>, %arg9: memref<8x128xf32, #tpu.memory_space<vmem>>) attributes {dimension_semantics = [#tpu.dimension_semantics<parallel>, #tpu.dimension_semantics<arbitrary>], iteration_bounds = array<i64: 1, 1>, scalar_prefetch = 0 : i64, scratch_operands = 2 : i64, tpu.core_type = #tpu.core_type<tc>, window_params = [{transform_indices = @transform_0, window_bounds = array<i64: 8, 8, 128>}, {transform_indices = @transform_1, window_bounds = array<i64: 8, 128>}, {pipeline_mode = #tpu.pipeline_mode<synchronous>, transform_indices = @transform_2, window_bounds = array<i64: 128, 128>}, {pipeline_mode = #tpu.pipeline_mode<synchronous>, transform_indices = @transform_3, window_bounds = array<i64: 128, 128>}, {pipeline_mode = #tpu.pipeline_mode<synchronous>, transform_indices = @transform_4, window_bounds = array<i64: 1, 128>}, {transform_indices = @transform_5, window_bounds = array<i64: 8, 8, 128>}]} {
    %c0_i32 = arith.constant 0 : i32
    %0 = arith.cmpi eq, %arg1, %c0_i32 : i32
    %1 = arith.extui %0 : i1 to i32
    %c0_i32_0 = arith.constant 0 : i32
    %2 = arith.cmpi ne, %1, %c0_i32_0 : i32
    scf.if %2 {
      %c0_65 = arith.constant 0 : index
      %c0_66 = arith.constant 0 : index
      %79 = vector.load %arg3[%c0_65, %c0_66] : memref<8x128xf32, #tpu.memory_space<vmem>>, vector<8x128xf32>
      %c0_67 = arith.constant 0 : index
      %c0_68 = arith.constant 0 : index
      %80 = vector.load %arg9[%c0_67, %c0_68] : memref<8x128xf32, #tpu.memory_space<vmem>>, vector<8x128xf32>
      tpu.vector_store %arg9[%c0_67, %c0_68], %79 {strides = array<i32>} : memref<8x128xf32, #tpu.memory_space<vmem>>, vector<8x128xf32>,
    } else {
    }
    %c0 = arith.constant 0 : index
    %c0_1 = arith.constant 0 : index
    %c0_2 = arith.constant 0 : index
    %3 = vector.load %arg2[%c0, %c0_1, %c0_2] : memref<8x8x128xf32, #tpu.memory_space<vmem>>, vector<8x8x128xf32>
    %4 = vector.shape_cast %3 : vector<8x8x128xf32> to vector<64x128xf32>
    %c0_3 = arith.constant 0 : index
    %c0_4 = arith.constant 0 : index
    %5 = vector.load %arg4[%c0_3, %c0_4] : memref<128x128xf32, #tpu.memory_space<vmem>>, vector<128x128xf32>
    %cst = arith.constant dense<0.000000e+00> : vector<64x128xf32>
    %6 = tpu.matmul %4, %5, %cst {dimension_numbers = #tpu.dot_dimension_numbers<[1], [0], [0], [1], [0, 0, 1, 1], [], []>} : vector<64x128xf32>, vector<128x128xf32>, vector<64x128xf32> -> vector<64x128xf32>
    %c0_5 = arith.constant 0 : index
    %c0_6 = arith.constant 0 : index
    %7 = vector.load %arg6[%c0_5, %c0_6] : memref<1x128xf32, #tpu.memory_space<vmem>>, vector<1x128xf32>
    %8 = vector.broadcast %7 : vector<1x128xf32> to vector<64x128xf32>
    %9 = arith.addf %6, %8 : vector<64x128xf32>
    %10 = vector.shape_cast %9 : vector<64x128xf32> to vector<8x8x128xf32>
    %c0_7 = arith.constant 0 : index
    %c0_8 = arith.constant 0 : index
    %c0_9 = arith.constant 0 : index
    %11 = vector.load %arg8[%c0_7, %c0_8, %c0_9] : memref<8x8x128xf32, #tpu.memory_space<vmem>>, vector<8x8x128xf32>
    tpu.vector_store %arg8[%c0_7, %c0_8, %c0_9], %10 {strides = array<i32>} : memref<8x8x128xf32, #tpu.memory_space<vmem>>, vector<8x8x128xf32>,
    %c0_10 = arith.constant 0 : index
    %c0_11 = arith.constant 0 : index
    %12 = vector.load %arg5[%c0_10, %c0_11] : memref<128x128xf32, #tpu.memory_space<vmem>>, vector<128x128xf32>
    %c0_12 = arith.constant 0 : index
    %c0_13 = arith.constant 0 : index
    %13 = vector.load %arg9[%c0_12, %c0_13] : memref<8x128xf32, #tpu.memory_space<vmem>>, vector<8x128xf32>
    %c7 = arith.constant 7 : index
    %c0_14 = arith.constant 0 : index
    %c0_15 = arith.constant 0 : index
    %14 = vector.load %arg8[%c7, %c0_14, %c0_15] : memref<8x8x128xf32, #tpu.memory_space<vmem>>, vector<1x8x128xf32>
    %15 = vector.shape_cast %14 : vector<1x8x128xf32> to vector<8x128xf32>
    %cst_16 = arith.constant dense<0.000000e+00> : vector<8x128xf32>
    %16 = tpu.matmul %13, %12, %cst_16 {dimension_numbers = #tpu.dot_dimension_numbers<[1], [0], [0], [1], [0, 0, 1, 1], [], []>} : vector<8x128xf32>, vector<128x128xf32>, vector<8x128xf32> -> vector<8x128xf32>
    %17 = arith.addf %15, %16 : vector<8x128xf32>
    %18 = math.tanh %17 : vector<8x128xf32>
    %c7_17 = arith.constant 7 : index
    %c0_18 = arith.constant 0 : index
    %c0_19 = arith.constant 0 : index
    %19 = vector.load %arg7[%c7_17, %c0_18, %c0_19] : memref<8x8x128xf32, #tpu.memory_space<vmem>>, vector<1x8x128xf32>
    %20 = vector.shape_cast %19 : vector<1x8x128xf32> to vector<8x128xf32>
    %21 = vector.shape_cast %18 : vector<8x128xf32> to vector<1x8x128xf32>
    tpu.vector_store %arg7[%c7_17, %c0_18, %c0_19], %21 {strides = array<i32>} : memref<8x8x128xf32, #tpu.memory_space<vmem>>, vector<1x8x128xf32>,
    %c6 = arith.constant 6 : index
    %c0_20 = arith.constant 0 : index
    %c0_21 = arith.constant 0 : index
    %22 = vector.load %arg8[%c6, %c0_20, %c0_21] : memref<8x8x128xf32, #tpu.memory_space<vmem>>, vector<1x8x128xf32>
    %23 = vector.shape_cast %22 : vector<1x8x128xf32> to vector<8x128xf32>
    %cst_22 = arith.constant dense<0.000000e+00> : vector<8x128xf32>
    %24 = tpu.matmul %18, %12, %cst_22 {dimension_numbers = #tpu.dot_dimension_numbers<[1], [0], [0], [1], [0, 0, 1, 1], [], []>} : vector<8x128xf32>, vector<128x128xf32>, vector<8x128xf32> -> vector<8x128xf32>
    %25 = arith.addf %23, %24 : vector<8x128xf32>
    %26 = math.tanh %25 : vector<8x128xf32>
    %c6_23 = arith.constant 6 : index
    %c0_24 = arith.constant 0 : index
    %c0_25 = arith.constant 0 : index
    %27 = vector.load %arg7[%c6_23, %c0_24, %c0_25] : memref<8x8x128xf32, #tpu.memory_space<vmem>>, vector<1x8x128xf32>
    %28 = vector.shape_cast %27 : vector<1x8x128xf32> to vector<8x128xf32>
    %29 = vector.shape_cast %26 : vector<8x128xf32> to vector<1x8x128xf32>
    tpu.vector_store %arg7[%c6_23, %c0_24, %c0_25], %29 {strides = array<i32>} : memref<8x8x128xf32, #tpu.memory_space<vmem>>, vector<1x8x128xf32>,
    %c5 = arith.constant 5 : index
    %c0_26 = arith.constant 0 : index
    %c0_27 = arith.constant 0 : index
    %30 = vector.load %arg8[%c5, %c0_26, %c0_27] : memref<8x8x128xf32, #tpu.memory_space<vmem>>, vector<1x8x128xf32>
    %31 = vector.shape_cast %30 : vector<1x8x128xf32> to vector<8x128xf32>
    %cst_28 = arith.constant dense<0.000000e+00> : vector<8x128xf32>
    %32 = tpu.matmul %26, %12, %cst_28 {dimension_numbers = #tpu.dot_dimension_numbers<[1], [0], [0], [1], [0, 0, 1, 1], [], []>} : vector<8x128xf32>, vector<128x128xf32>, vector<8x128xf32> -> vector<8x128xf32>
    %33 = arith.addf %31, %32 : vector<8x128xf32>
    %34 = math.tanh %33 : vector<8x128xf32>
    %c5_29 = arith.constant 5 : index
    %c0_30 = arith.constant 0 : index
    %c0_31 = arith.constant 0 : index
    %35 = vector.load %arg7[%c5_29, %c0_30, %c0_31] : memref<8x8x128xf32, #tpu.memory_space<vmem>>, vector<1x8x128xf32>
    %36 = vector.shape_cast %35 : vector<1x8x128xf32> to vector<8x128xf32>
    %37 = vector.shape_cast %34 : vector<8x128xf32> to vector<1x8x128xf32>
    tpu.vector_store %arg7[%c5_29, %c0_30, %c0_31], %37 {strides = array<i32>} : memref<8x8x128xf32, #tpu.memory_space<vmem>>, vector<1x8x128xf32>,
    %c4 = arith.constant 4 : index
    %c0_32 = arith.constant 0 : index
    %c0_33 = arith.constant 0 : index
    %38 = vector.load %arg8[%c4, %c0_32, %c0_33] : memref<8x8x128xf32, #tpu.memory_space<vmem>>, vector<1x8x128xf32>
    %39 = vector.shape_cast %38 : vector<1x8x128xf32> to vector<8x128xf32>
    %cst_34 = arith.constant dense<0.000000e+00> : vector<8x128xf32>
    %40 = tpu.matmul %34, %12, %cst_34 {dimension_numbers = #tpu.dot_dimension_numbers<[1], [0], [0], [1], [0, 0, 1, 1], [], []>} : vector<8x128xf32>, vector<128x128xf32>, vector<8x128xf32> -> vector<8x128xf32>
    %41 = arith.addf %39, %40 : vector<8x128xf32>
    %42 = math.tanh %41 : vector<8x128xf32>
    %c4_35 = arith.constant 4 : index
    %c0_36 = arith.constant 0 : index
    %c0_37 = arith.constant 0 : index
    %43 = vector.load %arg7[%c4_35, %c0_36, %c0_37] : memref<8x8x128xf32, #tpu.memory_space<vmem>>, vector<1x8x128xf32>
    %44 = vector.shape_cast %43 : vector<1x8x128xf32> to vector<8x128xf32>
    %45 = vector.shape_cast %42 : vector<8x128xf32> to vector<1x8x128xf32>
    tpu.vector_store %arg7[%c4_35, %c0_36, %c0_37], %45 {strides = array<i32>} : memref<8x8x128xf32, #tpu.memory_space<vmem>>, vector<1x8x128xf32>,
    %c3 = arith.constant 3 : index
    %c0_38 = arith.constant 0 : index
    %c0_39 = arith.constant 0 : index
    %46 = vector.load %arg8[%c3, %c0_38, %c0_39] : memref<8x8x128xf32, #tpu.memory_space<vmem>>, vector<1x8x128xf32>
    %47 = vector.shape_cast %46 : vector<1x8x128xf32> to vector<8x128xf32>
    %cst_40 = arith.constant dense<0.000000e+00> : vector<8x128xf32>
    %48 = tpu.matmul %42, %12, %cst_40 {dimension_numbers = #tpu.dot_dimension_numbers<[1], [0], [0], [1], [0, 0, 1, 1], [], []>} : vector<8x128xf32>, vector<128x128xf32>, vector<8x128xf32> -> vector<8x128xf32>
    %49 = arith.addf %47, %48 : vector<8x128xf32>
    %50 = math.tanh %49 : vector<8x128xf32>
    %c3_41 = arith.constant 3 : index
    %c0_42 = arith.constant 0 : index
    %c0_43 = arith.constant 0 : index
    %51 = vector.load %arg7[%c3_41, %c0_42, %c0_43] : memref<8x8x128xf32, #tpu.memory_space<vmem>>, vector<1x8x128xf32>
    %52 = vector.shape_cast %51 : vector<1x8x128xf32> to vector<8x128xf32>
    %53 = vector.shape_cast %50 : vector<8x128xf32> to vector<1x8x128xf32>
    tpu.vector_store %arg7[%c3_41, %c0_42, %c0_43], %53 {strides = array<i32>} : memref<8x8x128xf32, #tpu.memory_space<vmem>>, vector<1x8x128xf32>,
    %c2 = arith.constant 2 : index
    %c0_44 = arith.constant 0 : index
    %c0_45 = arith.constant 0 : index
    %54 = vector.load %arg8[%c2, %c0_44, %c0_45] : memref<8x8x128xf32, #tpu.memory_space<vmem>>, vector<1x8x128xf32>
    %55 = vector.shape_cast %54 : vector<1x8x128xf32> to vector<8x128xf32>
    %cst_46 = arith.constant dense<0.000000e+00> : vector<8x128xf32>
    %56 = tpu.matmul %50, %12, %cst_46 {dimension_numbers = #tpu.dot_dimension_numbers<[1], [0], [0], [1], [0, 0, 1, 1], [], []>} : vector<8x128xf32>, vector<128x128xf32>, vector<8x128xf32> -> vector<8x128xf32>
    %57 = arith.addf %55, %56 : vector<8x128xf32>
    %58 = math.tanh %57 : vector<8x128xf32>
    %c2_47 = arith.constant 2 : index
    %c0_48 = arith.constant 0 : index
    %c0_49 = arith.constant 0 : index
    %59 = vector.load %arg7[%c2_47, %c0_48, %c0_49] : memref<8x8x128xf32, #tpu.memory_space<vmem>>, vector<1x8x128xf32>
    %60 = vector.shape_cast %59 : vector<1x8x128xf32> to vector<8x128xf32>
    %61 = vector.shape_cast %58 : vector<8x128xf32> to vector<1x8x128xf32>
    tpu.vector_store %arg7[%c2_47, %c0_48, %c0_49], %61 {strides = array<i32>} : memref<8x8x128xf32, #tpu.memory_space<vmem>>, vector<1x8x128xf32>,
    %c1 = arith.constant 1 : index
    %c0_50 = arith.constant 0 : index
    %c0_51 = arith.constant 0 : index
    %62 = vector.load %arg8[%c1, %c0_50, %c0_51] : memref<8x8x128xf32, #tpu.memory_space<vmem>>, vector<1x8x128xf32>
    %63 = vector.shape_cast %62 : vector<1x8x128xf32> to vector<8x128xf32>
    %cst_52 = arith.constant dense<0.000000e+00> : vector<8x128xf32>
    %64 = tpu.matmul %58, %12, %cst_52 {dimension_numbers = #tpu.dot_dimension_numbers<[1], [0], [0], [1], [0, 0, 1, 1], [], []>} : vector<8x128xf32>, vector<128x128xf32>, vector<8x128xf32> -> vector<8x128xf32>
    %65 = arith.addf %63, %64 : vector<8x128xf32>
    %66 = math.tanh %65 : vector<8x128xf32>
    %c1_53 = arith.constant 1 : index
    %c0_54 = arith.constant 0 : index
    %c0_55 = arith.constant 0 : index
    %67 = vector.load %arg7[%c1_53, %c0_54, %c0_55] : memref<8x8x128xf32, #tpu.memory_space<vmem>>, vector<1x8x128xf32>
    %68 = vector.shape_cast %67 : vector<1x8x128xf32> to vector<8x128xf32>
    %69 = vector.shape_cast %66 : vector<8x128xf32> to vector<1x8x128xf32>
    tpu.vector_store %arg7[%c1_53, %c0_54, %c0_55], %69 {strides = array<i32>} : memref<8x8x128xf32, #tpu.memory_space<vmem>>, vector<1x8x128xf32>,
    %c0_56 = arith.constant 0 : index
    %c0_57 = arith.constant 0 : index
    %c0_58 = arith.constant 0 : index
    %70 = vector.load %arg8[%c0_56, %c0_57, %c0_58] : memref<8x8x128xf32, #tpu.memory_space<vmem>>, vector<1x8x128xf32>
    %71 = vector.shape_cast %70 : vector<1x8x128xf32> to vector<8x128xf32>
    %cst_59 = arith.constant dense<0.000000e+00> : vector<8x128xf32>
    %72 = tpu.matmul %66, %12, %cst_59 {dimension_numbers = #tpu.dot_dimension_numbers<[1], [0], [0], [1], [0, 0, 1, 1], [], []>} : vector<8x128xf32>, vector<128x128xf32>, vector<8x128xf32> -> vector<8x128xf32>
    %73 = arith.addf %71, %72 : vector<8x128xf32>
    %74 = math.tanh %73 : vector<8x128xf32>
    %c0_60 = arith.constant 0 : index
    %c0_61 = arith.constant 0 : index
    %c0_62 = arith.constant 0 : index
    %75 = vector.load %arg7[%c0_60, %c0_61, %c0_62] : memref<8x8x128xf32, #tpu.memory_space<vmem>>, vector<1x8x128xf32>
    %76 = vector.shape_cast %75 : vector<1x8x128xf32> to vector<8x128xf32>
    %77 = vector.shape_cast %74 : vector<8x128xf32> to vector<1x8x128xf32>
    tpu.vector_store %arg7[%c0_60, %c0_61, %c0_62], %77 {strides = array<i32>} : memref<8x8x128xf32, #tpu.memory_space<vmem>>, vector<1x8x128xf32>,
    %c0_63 = arith.constant 0 : index
    %c0_64 = arith.constant 0 : index
    %78 = vector.load %arg9[%c0_63, %c0_64] : memref<8x128xf32, #tpu.memory_space<vmem>>, vector<8x128xf32>
    tpu.vector_store %arg9[%c0_63, %c0_64], %74 {strides = array<i32>} : memref<8x128xf32, #tpu.memory_space<vmem>>, vector<8x128xf32>,
    return
  }
  func.func @transform_0(%arg0: i32, %arg1: i32) -> (i32, i32, i32) {
    %c0_i32 = arith.constant 0 : i32
    %0 = arith.subi %c0_i32, %arg1 : i32
    %c0_i32_0 = arith.constant 0 : i32
    %c0_i32_1 = arith.constant 0 : i32
    return %0, %arg0, %c0_i32_0 : i32, i32, i32
  }
  func.func @transform_1(%arg0: i32, %arg1: i32) -> (i32, i32) {
    %c0_i32 = arith.constant 0 : i32
    %c0_i32_0 = arith.constant 0 : i32
    return %arg0, %c0_i32 : i32, i32
  }
  func.func @transform_2(%arg0: i32, %arg1: i32) -> (i32, i32) {
    %c0_i32 = arith.constant 0 : i32
    %c0_i32_0 = arith.constant 0 : i32
    %c0_i32_1 = arith.constant 0 : i32
    return %c0_i32, %c0_i32_0 : i32, i32
  }
  func.func @transform_3(%arg0: i32, %arg1: i32) -> (i32, i32) {
    %c0_i32 = arith.constant 0 : i32
    %c0_i32_0 = arith.constant 0 : i32
    %c0_i32_1 = arith.constant 0 : i32
    return %c0_i32, %c0_i32_0 : i32, i32
  }
  func.func @transform_4(%arg0: i32, %arg1: i32) -> (i32, i32) {
    %c0_i32 = arith.constant 0 : i32
    %c0_i32_0 = arith.constant 0 : i32
    %c0_i32_1 = arith.constant 0 : i32
    return %c0_i32, %c0_i32_0 : i32, i32
  }
  func.func @transform_5(%arg0: i32, %arg1: i32) -> (i32, i32, i32) {
    %c0_i32 = arith.constant 0 : i32
    %0 = arith.subi %c0_i32, %arg1 : i32
    %c0_i32_0 = arith.constant 0 : i32
    %c0_i32_1 = arith.constant 0 : i32
    return %0, %arg0, %c0_i32_0 : i32, i32, i32
  }
}

</mosaic_0001>

<bundles_post_ra>
// kernel: tpu_custom_call.1
= control target key start
LH: loop header
LB: loop body
LE: loop exit
PB: predicated region body
PF: predicated region fallthrough
CT: control target
= control target key end

     0   :  { %10 = vsyncpa [#allocation5], 0  ;;  %s2040_s0 = inlined_call_operand.hbm [shape: f32[8,8,128], index: 0, kind: input, shape index: {}]   ;;  %s2041_s1 = inlined_call_operand.hbm [shape: f32[8,128], index: 1, kind: input, shape index: {}]   ;;  %s2042_s2 = inlined_call_operand.hbm [shape: f32[128,128], index: 2, kind: input, shape index: {}]   ;;  %s2043_s3 = inlined_call_operand.hbm [shape: f32[128,128], index: 3, kind: input, shape index: {}]   ;;  %s2044_s4 = inlined_call_operand.vmem [shape: f32[1,128], index: 4, kind: input, shape index: {}]   ;;  %s2045_s5 = inlined_call_operand.hbm [shape: f32[8,8,128], index: 5, kind: output, shape index: {}]  }
   0x1   :  { %11 = vsyncpa [#allocation8], 0 }
   0x2   :  { %12 = vsyncpa [#allocation11], 0 }
   0x3   :  { %13 = vsyncpa [#allocation6], 0  ;;  %s1736_s18 = smov [#allocation7]   ;;  %s1737_s20 = smov [#allocation4]  }
   0x4   :  { %s36_s19 = sshll.u32 %s1736_s18, 4  ;;  %s23_s21 = sshll.u32 %s1737_s20, 4  ;;  %s37_s19 = int_to_ptr.vmem [resolvable:$true] %s36_s19  ;;  %s1776_s21 = int_to_ptr.vmem [resolvable:$true] %s23_s21 }
   0x5   :  { %s1618_s24 = scalar_lea.hbm %s2041_s1, 128 }
   0x6   :  { %p1619_p0 = scmp.ne.s32.totalorder %s2041_s1, %s1618_s24  ;;  %p1622_p1 = scmp.lt.u32.totalorder %s1618_s24, %s2041_s1 }
   0x8   :  { %p1624_p2 = pnand %p1622_p1, %p1619_p0 }
   0xa   :  { %1627 = shalt.err (!%p1624_p2)
}
   0xb   :  { %s1628_s29 = scalar_lea.vmem %s37_s19, 128  ;;  %p1633_p4 = scmp.lt.s32.totalorder %s37_s19, %s37_s19 }
   0xc   :  { %p1629_p3 = scmp.ne.s32.totalorder %s37_s19, %s1628_s29  ;;  %p1634_p5 = scmp.lt.s32.totalorder %s1628_s29, %s1628_s29 }
   0xe   :  { %p1635_p6 = por %p1634_p5, %p1633_p4 }
  0x10   :  { %p1636_p7 = pnand %p1635_p6, %p1629_p3 }
  0x12   :  { %1639 = shalt.err (!%p1636_p7)
}
  0x13   :  { %39 = dma.hbm_to_vmem [thread:$0]  %s2041_s1, 128, %s37_s19, [#allocation8]  }
  0x14   :  { %s1640_s9 = scalar_lea.hbm %s2040_s0, 1024 }
  0x15   :  { %p1641_p8 = scmp.ne.s32.totalorder %s2040_s0, %s1640_s9  ;;  %p1644_p9 = scmp.lt.u32.totalorder %s1640_s9, %s2040_s0 }
  0x17   :  { %p1646_p10 = pnand %p1644_p9, %p1641_p8 }
  0x19   :  { %1649 = shalt.err (!%p1646_p10)
}
  0x1a   :  { %s1650_s14 = scalar_lea.vmem %s1776_s21, 1024  ;;  %p1655_p12 = scmp.lt.s32.totalorder %s1776_s21, %s1776_s21 }
  0x1b   :  { %p1651_p11 = scmp.ne.s32.totalorder %s1776_s21, %s1650_s14  ;;  %p1656_p13 = scmp.lt.s32.totalorder %s1650_s14, %s1650_s14 }
  0x1d   :  { %p1657_p0 = por %p1656_p13, %p1655_p12 }
  0x1f   :  { %p1658_p1 = pnand %p1657_p0, %p1651_p11 }
  0x21   :  { %1661 = shalt.err (!%p1658_p1)
}
  0x22   :  { %s1738_s1 = smov 128   ;;  %s1739_s15 = smov 8  }
  0x23   :  { %29 = dma.hbm_to_vmem [thread:$0]  %s2040_s0, 1024, %s1776_s21, [#allocation5], %s1738_s1, %s1738_s1, %s1739_s15  }
  0x24   :  { %s1740_s18 = smov [#allocation9]   ;;  %s1741_s20 = smov [#allocation10]  }
  0x25   :  { %s45_s19 = sshll.u32 %s1740_s18, 4  ;;  %s57_s22 = sshll.u32 %s1741_s20, 4  ;;  %s46_s19 = int_to_ptr.vmem [resolvable:$true] %s45_s19  ;;  %s1810_s22 = int_to_ptr.vmem [resolvable:$true] %s57_s22 }
  0x26   :  { %s1662_s25 = scalar_lea.hbm %s2042_s2, 2048 }
  0x27   :  { %p1663_p2 = scmp.ne.s32.totalorder %s2042_s2, %s1662_s25  ;;  %p1666_p3 = scmp.lt.u32.totalorder %s1662_s25, %s2042_s2 }
  0x29   :  { %p1668_p4 = pnand %p1666_p3, %p1663_p2 }
  0x2b   :  { %1671 = shalt.err (!%p1668_p4)
}
  0x2c   :  { %s1672_s0 = scalar_lea.vmem %s46_s19, 2048  ;;  %p1677_p6 = scmp.lt.s32.totalorder %s46_s19, %s46_s19 }
  0x2d   :  { %p1673_p5 = scmp.ne.s32.totalorder %s46_s19, %s1672_s0  ;;  %p1678_p7 = scmp.lt.s32.totalorder %s1672_s0, %s1672_s0 }
  0x2f   :  { %p1679_p8 = por %p1678_p7, %p1677_p6 }
  0x31   :  { %p1680_p9 = pnand %p1679_p8, %p1673_p5 }
  0x33   :  { %1683 = shalt.err (!%p1680_p9)
}
  0x34   :  { %51 = dma.hbm_to_vmem [thread:$0]  %s2042_s2, 2048, %s46_s19, [#allocation8], %s1738_s1, %s1738_s1, %s1739_s15  }
  0x35   :  { %s1684_s8 = scalar_lea.hbm %s2043_s3, 2048 }
  0x36   :  { %p1685_p10 = scmp.ne.s32.totalorder %s2043_s3, %s1684_s8  ;;  %p1688_p11 = scmp.lt.u32.totalorder %s1684_s8, %s2043_s3 }
  0x38   :  { %p1690_p12 = pnand %p1688_p11, %p1685_p10 }
  0x3a   :  { %1693 = shalt.err (!%p1690_p12)
}
  0x3b   :  { %s1694_s13 = scalar_lea.vmem %s1810_s22, 2048  ;;  %p1699_p0 = scmp.lt.s32.totalorder %s1810_s22, %s1810_s22 }
  0x3c   :  { %p1695_p13 = scmp.ne.s32.totalorder %s1810_s22, %s1694_s13  ;;  %p1700_p1 = scmp.lt.s32.totalorder %s1694_s13, %s1694_s13 }
  0x3e   :  { %p1701_p2 = por %p1700_p1, %p1699_p0 }
  0x40   :  { %p1702_p3 = pnand %p1701_p2, %p1695_p13 }
  0x42   :  { %1705 = shalt.err (!%p1702_p3)
}
  0x43   :  { %63 = dma.hbm_to_vmem [thread:$0]  %s2043_s3, 2048, %s1810_s22, [#allocation11], %s1738_s1, %s1738_s1, %s1739_s15  }
  0x44   :  { %1728 = dma.done.wait [#allocation5], 1024  }
  0x45   :  { %1729 = vsyncadd [#allocation5], 4294966272 }
  0x46   :  { %1730 = dma.done.wait [#allocation8], 2176  }
  0x47   :  { %1731 = vsyncadd [#allocation8], 4294965120 }
  0x48   :  { %1732 = dma.done.wait [#allocation11], 2048  }
  0x49   :  { %1733 = vsyncadd [#allocation11], 4294965248  ;;  %v1742_v0 = vmov 0.0|0.0   ;;  %vm1743_vm0 = vmmov 0   ;;  %v1744_v1 = vmov 0.0   ;;  %v96_v2 = vld [vmem:[#allocation9] sm:$0xff] }
  0x4a   :  { %1400 = vmatprep.subr.bf16.mxu1 %v1742_v0  ;;  %1120 = vmatprep.mubr.msk.f32.mxu1 %vm1743_vm0, %v1744_v1  ;;  %v97_v3 = vld [vmem:[#allocation9 + $0x8] sm:$0xff]  ;;  %v98_v4 = vld [vmem:[#allocation9 + $0x10] sm:$0xff]  ;;  %v99_v6 = vld [vmem:[#allocation9 + $0x18] sm:$0xff] }
  0x4b   :  { %v1368_v5 = vpack.c.bf16 %v97_v3, %v96_v2  ;;  %v1372_v7 = vpack.c.bf16 %v99_v6, %v98_v4  ;;  %v100_v8 = vld [vmem:[#allocation9 + $0x20] sm:$0xff]  ;;  %v101_v9 = vld [vmem:[#allocation9 + $0x28] sm:$0xff]  ;;  %v234_v13 = vld [vmem:[#allocation10 + $0x10] sm:$0xff] }
  0x4c   :  { %v232_v10 = vld [vmem:[#allocation10] sm:$0xff]  ;;  %v233_v11 = vld [vmem:[#allocation10 + $0x8] sm:$0xff]  ;;  %v235_v14 = vld [vmem:[#allocation10 + $0x18] sm:$0xff]  ;;  %v1376_v15 = vpack.c.bf16 %v101_v9, %v100_v8 }
  0x4d   :  { %1369 = vmatprep.subr.bf16.mxu0 %v1368_v5  ;;  %v1850_v12 = vpack.c.bf16 %v233_v11, %v232_v10  ;;  %v102_v16 = vld [vmem:[#allocation9 + $0x30] sm:$0xff]  ;;  %v103_v17 = vld [vmem:[#allocation9 + $0x38] sm:$0xff]  ;;  %v1853_v18 = vpack.c.bf16 %v235_v14, %v234_v13  ;;  %v236_v19 = vld [vmem:[#allocation10 + $0x20] sm:$0xff] }
  0x4e   :  { %1371 = vmatpush3.bf16.msra.mxu0 %v1368_v5  ;;  %v237_v20 = vld [vmem:[#allocation10 + $0x28] sm:$0xff]  ;;  %v88_v21 = vld [vmem:[#allocation4] sm:$0xff]  ;;  %v1380_v22 = vpack.c.bf16 %v103_v17, %v102_v16  ;;  %v104_v23 = vld [vmem:[#allocation9 + $0x40] sm:$0xff] }
  0x4f   :  { %1373 = vmatprep.subr.bf16.mxu0 %v1372_v7  ;;  %1402 = vmatpush3.bf16.msra.mxu1 %v1850_v12  ;;  %v105_v24 = vld [vmem:[#allocation9 + $0x48] sm:$0xff]  ;;  %v1857_v25 = vpack.c.bf16 %v237_v20, %v236_v19  ;;  %v238_v26 = vld [vmem:[#allocation10 + $0x30] sm:$0xff]  ;;  %v239_v27 = vld [vmem:[#allocation10 + $0x38] sm:$0xff] }
  0x50   :  { %1403 = vmatprep.subr.bf16.mxu1 %v1742_v0  ;;  %1076 = vmatprep.mubr.f32.mxu0 %v88_v21  ;;  %v1384_v28 = vpack.c.bf16 %v105_v24, %v104_v23  ;;  %v106_v29 = vld [vmem:[#allocation9 + $0x50] sm:$0xff]  ;;  %v107_v30 = vld [vmem:[#allocation9 + $0x58] sm:$0xff]  ;;  %v1861_v31 = vpack.c.bf16 %v239_v27, %v238_v26  ;;  %v240_v32 = vld [vmem:[#allocation10 + $0x40] sm:$0xff] }
  0x51   :  { %v241_v33 = vld [vmem:[#allocation10 + $0x48] sm:$0xff]  ;;  %v1388_v34 = vpack.c.bf16 %v107_v30, %v106_v29  ;;  %v108_v35 = vld [vmem:[#allocation9 + $0x60] sm:$0xff]  ;;  %v242_v38 = vld [vmem:[#allocation10 + $0x50] sm:$0xff] }
  0x52   :  { %1375 = vmatpush3.bf16.msra.mxu0 %v1372_v7  ;;  %v109_v36 = vld [vmem:[#allocation9 + $0x68] sm:$0xff]  ;;  %v1865_v37 = vpack.c.bf16 %v241_v33, %v240_v32  ;;  %v243_v39 = vld [vmem:[#allocation10 + $0x58] sm:$0xff]  ;;  %v110_v41 = vld [vmem:[#allocation9 + $0x70] sm:$0xff] }
  0x53   :  { %1377 = vmatprep.subr.bf16.mxu0 %v1376_v15  ;;  %1405 = vmatpush3.bf16.msra.mxu1 %v1853_v18  ;;  %v1392_v40 = vpack.c.bf16 %v109_v36, %v108_v35  ;;  %v111_v42 = vld [vmem:[#allocation9 + $0x78] sm:$0xff]  ;;  %v1869_v43 = vpack.c.bf16 %v243_v39, %v242_v38  ;;  %v244_v44 = vld [vmem:[#allocation10 + $0x60] sm:$0xff]  ;;  %v245_v45 = vld [vmem:[#allocation10 + $0x68] sm:$0xff] }
  0x54   :  { %1406 = vmatprep.subr.bf16.mxu1 %v1742_v0  ;;  %v1396_v46 = vpack.c.bf16 %v111_v42, %v110_v41  ;;  %v1873_v47 = vpack.c.bf16 %v245_v45, %v244_v44  ;;  %v246_v48 = vld [vmem:[#allocation10 + $0x70] sm:$0xff]  ;;  %v247_v49 = vld [vmem:[#allocation10 + $0x78] sm:$0xff]  ;;  %v89_v51 = vld [vmem:[#allocation4 + $0x8] sm:$0xff] }
  0x55   :  { %v1877_v50 = vpack.c.bf16 %v247_v49, %v246_v48  ;;  %v90_v52 = vld [vmem:[#allocation4 + $0x10] sm:$0xff]  ;;  %v86_v53 = vld [vmem:[#allocation7] sm:$0xff]  ;;  %v91_v54 = vld [vmem:[#allocation4 + $0x18] sm:$0xff] }
  0x56   :  { %1379 = vmatpush3.bf16.msra.mxu0 %v1376_v15  ;;  %v92_v55 = vld [vmem:[#allocation4 + $0x20] sm:$0xff]  ;;  %v93_v56 = vld [vmem:[#allocation4 + $0x28] sm:$0xff]  ;;  %v94_v57 = vld [vmem:[#allocation4 + $0x30] sm:$0xff] }
  0x57   :  { %1381 = vmatprep.subr.bf16.mxu0 %v1380_v22  ;;  %1408 = vmatpush3.bf16.msra.mxu1 %v1857_v25  ;;  %v95_v58 = vld [vmem:[#allocation4 + $0x38] sm:$0xff]  ;;  %v883_v59 = vld [vmem:[%s2044_s4] ss:$0 sm:$0xff]  ;;  %s1745_s4 = smov [#allocation12]  }
  0x58   :  { %1409 = vmatprep.subr.bf16.mxu1 %v1742_v0  ;;  %s865_s17 = sshll.u32 %s1745_s4, 4  ;;  %s866_s17 = int_to_ptr.vmem [resolvable:$true] %s865_s17 }
  0x59   :  { %s1706_s18 = scalar_lea.vmem %s866_s17, 1024  ;;  %p1711_p5 = scmp.lt.s32.totalorder %s866_s17, %s866_s17 }
  0x5a   :  { %1383 = vmatpush3.bf16.msra.mxu0 %v1380_v22  ;;  %p1707_p4 = scmp.ne.s32.totalorder %s866_s17, %s1706_s18  ;;  %p1712_p6 = scmp.lt.s32.totalorder %s1706_s18, %s1706_s18 }
  0x5b   :  { %1385 = vmatprep.subr.bf16.mxu0 %v1384_v28  ;;  %1411 = vmatpush3.bf16.msra.mxu1 %v1861_v31 }
  0x5c   :  { %1412 = vmatprep.subr.bf16.mxu1 %v1742_v0  ;;  %p1713_p7 = por %p1712_p6, %p1711_p5 }
  0x5e   :  { %1387 = vmatpush3.bf16.msra.mxu0 %v1384_v28  ;;  %p1714_p8 = pnand %p1713_p7, %p1707_p4 }
  0x5f   :  { %1389 = vmatprep.subr.bf16.mxu0 %v1388_v34  ;;  %1414 = vmatpush3.bf16.msra.mxu1 %v1865_v37 }
  0x60   :  { %1415 = vmatprep.subr.bf16.mxu1 %v1742_v0 }
  0x62   :  { %1391 = vmatpush3.bf16.msra.mxu0 %v1388_v34 }
  0x63   :  { %1393 = vmatprep.subr.bf16.mxu0 %v1392_v40  ;;  %1417 = vmatpush3.bf16.msra.mxu1 %v1869_v43 }
  0x64   :  { %1418 = vmatprep.subr.bf16.mxu1 %v1742_v0 }
  0x66   :  { %1395 = vmatpush3.bf16.msra.mxu0 %v1392_v40 }
  0x67   :  { %1397 = vmatprep.subr.bf16.mxu0 %v1396_v46  ;;  %1420 = vmatpush3.bf16.msra.mxu1 %v1873_v47 }
  0x68   :  { %1421 = vmatprep.subr.bf16.mxu1 %v1742_v0 }
  0x6a   :  { %1399 = vmatpush3.bf16.msra.mxu0 %v1396_v46 }
  0x6b   :  { %1424 = vmatprep.subr.bf16.mxu0 %v1742_v0  ;;  %1423 = vmatpush3.bf16.msra.mxu1 %v1877_v50 }
  0x6c   :  { %1448 = vmatprep.subr.bf16.mxu1 %v1742_v0 }
  0x6d   :  { %1077 = vmatmul.mubr.f32.vlgmr.msra.gmra.mrb[0].mxu0 %v89_v51 }
  0x6e   :  { %1079 = vmatprep.mubr.f32.mxu0 %v90_v52  ;;  %1426 = vmatpush3.bf16.msra.mxu0 %v1850_v12 }
  0x6f   :  { %1121 = vmatmul.mubr.f32.vlgmr.msra.gmra.mrb[0].mxu1 %v86_v53  ;;  %1427 = vmatprep.subr.bf16.mxu0 %v1742_v0 }
  0x70   :  { %1450 = vmatpush3.bf16.msra.mxu1 %v1850_v12  ;;  %1190 = vmatprep.mubr.msk.f32.mxu1 %vm1743_vm0, %v1744_v1 }
  0x71   :  { %1080 = vmatmul.mubr.f32.gmra.mrb[2].mxu0 %v91_v54  ;;  %1451 = vmatprep.subr.bf16.mxu1 %v1742_v0 }
  0x72   :  { %1082 = vmatprep.mubr.f32.mxu0 %v92_v55  ;;  %1429 = vmatpush3.bf16.msra.mxu0 %v1853_v18 }
  0x73   :  { %1430 = vmatprep.subr.bf16.mxu0 %v1742_v0 }
  0x74   :  { %1453 = vmatpush3.bf16.msra.mxu1 %v1853_v18 }
  0x75   :  { %1083 = vmatmul.mubr.f32.gmra.mrb[4].mxu0 %v93_v56  ;;  %1454 = vmatprep.subr.bf16.mxu1 %v1742_v0 }
  0x76   :  { %1085 = vmatprep.mubr.f32.mxu0 %v94_v57  ;;  %1432 = vmatpush3.bf16.msra.mxu0 %v1857_v25 }
  0x77   :  { %1433 = vmatprep.subr.bf16.mxu0 %v1742_v0 }
  0x78   :  { %1456 = vmatpush3.bf16.msra.mxu1 %v1857_v25 }
  0x79   :  { %1086 = vmatmul.mubr.f32.gmra.mrb[6].mxu0 %v95_v58  ;;  %1457 = vmatprep.subr.bf16.mxu1 %v1742_v0 }
  0x7a   :  { %1435 = vmatpush3.bf16.msra.mxu0 %v1861_v31  ;;  %1155 = vmatprep.mubr.msk.f32.mxu0 %vm1743_vm0, %v1744_v1 }
  0x7b   :  { %1436 = vmatprep.subr.bf16.mxu0 %v1742_v0 }
  0x7c   :  { %1459 = vmatpush3.bf16.msra.mxu1 %v1861_v31 }
  0x7d   :  { %1460 = vmatprep.subr.bf16.mxu1 %v1742_v0 }
  0x7e   :  { %1438 = vmatpush3.bf16.msra.mxu0 %v1865_v37 }
  0x7f   :  { %1439 = vmatprep.subr.bf16.mxu0 %v1742_v0 }
  0x80   :  { %1462 = vmatpush3.bf16.msra.mxu1 %v1865_v37 }
  0x81   :  { %1463 = vmatprep.subr.bf16.mxu1 %v1742_v0 }
  0x82   :  { %1441 = vmatpush3.bf16.msra.mxu0 %v1869_v43 }
  0x83   :  { %1442 = vmatprep.subr.bf16.mxu0 %v1742_v0 }
  0x84   :  { %1465 = vmatpush3.bf16.msra.mxu1 %v1869_v43 }
  0x85   :  { %1466 = vmatprep.subr.bf16.mxu1 %v1742_v0 }
  0x86   :  { %1444 = vmatpush3.bf16.msra.mxu0 %v1873_v47 }
  0x87   :  { %1445 = vmatprep.subr.bf16.mxu0 %v1742_v0 }
  0x88   :  { %1468 = vmatpush3.bf16.msra.mxu1 %v1873_v47 }
  0x89   :  { %1469 = vmatprep.subr.bf16.mxu1 %v1742_v0 }
  0x8a   :  { %1447 = vmatpush3.bf16.msra.mxu0 %v1877_v50 }
  0x8b   :  { %1472 = vmatprep.subr.bf16.mxu0 %v1742_v0 }
  0x8c   :  { %1471 = vmatpush3.bf16.msra.mxu1 %v1877_v50 }
  0x8d   :  { %1496 = vmatprep.subr.bf16.mxu1 %v1742_v0 }
 0x140   :  { %v1078_v60 = vpop.f32.mrb[0].mxu0 }
 0x141   :  { %v1922_v61 = vadd.f32 %v1078_v60, %v883_v59  ;;  %v185_v62 = vpop.f32.mrb[1].mxu0 }
 0x142   :  { %v1924_v63 = vadd.f32 %v883_v59, %v185_v62  ;;  %v317_v2 = vpop.f32.mrb[0].mxu1 }
 0x143   :  { %v1122_v3 = vpop.f32.mrb[1].mxu1 }
 0x144   :  { %v1081_v4 = vpop.f32.mrb[2].mxu0 }
 0x145   :  { %v1926_v5 = vadd.f32 %v1081_v4, %v883_v59  ;;  %v195_v6 = vpop.f32.mrb[3].mxu0 }
 0x146   :  { %v1928_v7 = vadd.f32 %v883_v59, %v195_v6 }
 0x148   :  { %v1084_v8 = vpop.f32.mrb[4].mxu0 }
 0x149   :  { %v211_v9 = vadd.f32 %v1084_v8, %v883_v59  ;;  %v205_v10 = vpop.f32.mrb[5].mxu0 }
 0x14a   :  { %v1930_v11 = vadd.f32 %v883_v59, %v205_v10 }
 0x14c   :  { %v1087_v13 = vpop.f32.mrb[6].mxu0 }
 0x14d   :  { %v221_v14 = vadd.f32 %v1087_v13, %v883_v59  ;;  %v215_v15 = vpop.f32.mrb[7].mxu0 }
 0x14e   :  { %v216_v16 = vadd.f32 %v883_v59, %v215_v15 }
 0x14f   :  { %v321_v17 = vadd.f32 %v317_v2, %v221_v14 }
 0x151   :  { %1602 = vtanh.f32 %v321_v17 }
 0x15b   :  { %v1603_v19 = vpop.eup %1602 }
 0x15c   :  { %324 = vst [vmem:[#allocation12 + $0x38] sm:$0xff] %v1603_v19  ;;  %1156 = vmatmul.mubr.f32.vlgmr.msra.gmra.mrb[8].mxu0 %v1603_v19 }
 0x15d   :  { %1474 = vmatpush3.bf16.msra.mxu0 %v1850_v12  ;;  %1225 = vmatprep.mubr.msk.f32.mxu0 %vm1743_vm0, %v1744_v1 }
 0x15e   :  { %1475 = vmatprep.subr.bf16.mxu0 %v1742_v0 }
 0x161   :  { %1477 = vmatpush3.bf16.msra.mxu0 %v1853_v18 }
 0x162   :  { %1478 = vmatprep.subr.bf16.mxu0 %v1742_v0 }
 0x165   :  { %1480 = vmatpush3.bf16.msra.mxu0 %v1857_v25 }
 0x166   :  { %1481 = vmatprep.subr.bf16.mxu0 %v1742_v0 }
 0x169   :  { %1483 = vmatpush3.bf16.msra.mxu0 %v1861_v31 }
 0x16a   :  { %1484 = vmatprep.subr.bf16.mxu0 %v1742_v0 }
 0x16d   :  { %1486 = vmatpush3.bf16.msra.mxu0 %v1865_v37 }
 0x16e   :  { %1487 = vmatprep.subr.bf16.mxu0 %v1742_v0 }
 0x171   :  { %1489 = vmatpush3.bf16.msra.mxu0 %v1869_v43 }
 0x172   :  { %1490 = vmatprep.subr.bf16.mxu0 %v1742_v0 }
 0x175   :  { %1492 = vmatpush3.bf16.msra.mxu0 %v1873_v47 }
 0x176   :  { %1493 = vmatprep.subr.bf16.mxu0 %v1742_v0 }
 0x179   :  { %1495 = vmatpush3.bf16.msra.mxu0 %v1877_v50 }
 0x17a   :  { %1520 = vmatprep.subr.bf16.mxu0 %v1742_v0 }
 0x22f   :  { %v393_v20 = vpop.f32.mrb[8].mxu0 }
 0x230   :  { %v397_v21 = vadd.f32 %v393_v20, %v216_v16  ;;  %v1157_v22 = vpop.f32.mrb[9].mxu0 }
 0x232   :  { %1604 = vtanh.f32 %v397_v21 }
 0x23c   :  { %v1605_v23 = vpop.eup %1604 }
 0x23d   :  { %400 = vst [vmem:[#allocation12 + $0x30] sm:$0xff] %v1605_v23  ;;  %1191 = vmatmul.mubr.f32.vlgmr.msra.gmra.mrb[2].mxu1 %v1605_v23 }
 0x23e   :  { %1498 = vmatpush3.bf16.msra.mxu1 %v1850_v12  ;;  %1260 = vmatprep.mubr.msk.f32.mxu1 %vm1743_vm0, %v1744_v1 }
 0x23f   :  { %1499 = vmatprep.subr.bf16.mxu1 %v1742_v0 }
 0x242   :  { %1501 = vmatpush3.bf16.msra.mxu1 %v1853_v18 }
 0x243   :  { %1502 = vmatprep.subr.bf16.mxu1 %v1742_v0 }
 0x246   :  { %1504 = vmatpush3.bf16.msra.mxu1 %v1857_v25 }
 0x247   :  { %1505 = vmatprep.subr.bf16.mxu1 %v1742_v0 }
 0x24a   :  { %1507 = vmatpush3.bf16.msra.mxu1 %v1861_v31 }
 0x24b   :  { %1508 = vmatprep.subr.bf16.mxu1 %v1742_v0 }
 0x24e   :  { %1510 = vmatpush3.bf16.msra.mxu1 %v1865_v37 }
 0x24f   :  { %1511 = vmatprep.subr.bf16.mxu1 %v1742_v0 }
 0x252   :  { %1513 = vmatpush3.bf16.msra.mxu1 %v1869_v43 }
 0x253   :  { %1514 = vmatprep.subr.bf16.mxu1 %v1742_v0 }
 0x256   :  { %1516 = vmatpush3.bf16.msra.mxu1 %v1873_v47 }
 0x257   :  { %1517 = vmatprep.subr.bf16.mxu1 %v1742_v0 }
 0x25a   :  { %1519 = vmatpush3.bf16.msra.mxu1 %v1877_v50 }
 0x25b   :  { %1544 = vmatprep.subr.bf16.mxu1 %v1742_v0 }
 0x310   :  { %v469_v24 = vpop.f32.mrb[2].mxu1 }
 0x311   :  { %v473_v26 = vadd.f32 %v469_v24, %v211_v9  ;;  %v1192_v27 = vpop.f32.mrb[3].mxu1 }
 0x313   :  { %1606 = vtanh.f32 %v473_v26 }
 0x31d   :  { %v1607_v28 = vpop.eup %1606 }
 0x31e   :  { %476 = vst [vmem:[#allocation12 + $0x28] sm:$0xff] %v1607_v28  ;;  %1226 = vmatmul.mubr.f32.vlgmr.msra.gmra.mrb[10].mxu0 %v1607_v28 }
 0x31f   :  { %1522 = vmatpush3.bf16.msra.mxu0 %v1850_v12  ;;  %1295 = vmatprep.mubr.msk.f32.mxu0 %vm1743_vm0, %v1744_v1 }
 0x320   :  { %1523 = vmatprep.subr.bf16.mxu0 %v1742_v0 }
 0x323   :  { %1525 = vmatpush3.bf16.msra.mxu0 %v1853_v18 }
 0x324   :  { %1526 = vmatprep.subr.bf16.mxu0 %v1742_v0 }
 0x327   :  { %1528 = vmatpush3.bf16.msra.mxu0 %v1857_v25 }
 0x328   :  { %1529 = vmatprep.subr.bf16.mxu0 %v1742_v0 }
 0x32b   :  { %1531 = vmatpush3.bf16.msra.mxu0 %v1861_v31 }
 0x32c   :  { %1532 = vmatprep.subr.bf16.mxu0 %v1742_v0 }
 0x32f   :  { %1534 = vmatpush3.bf16.msra.mxu0 %v1865_v37 }
 0x330   :  { %1535 = vmatprep.subr.bf16.mxu0 %v1742_v0 }
 0x333   :  { %1537 = vmatpush3.bf16.msra.mxu0 %v1869_v43 }
 0x334   :  { %1538 = vmatprep.subr.bf16.mxu0 %v1742_v0 }
 0x337   :  { %1540 = vmatpush3.bf16.msra.mxu0 %v1873_v47 }
 0x338   :  { %1541 = vmatprep.subr.bf16.mxu0 %v1742_v0 }
 0x33b   :  { %1543 = vmatpush3.bf16.msra.mxu0 %v1877_v50 }
 0x33c   :  { %1568 = vmatprep.subr.bf16.mxu0 %v1742_v0 }
 0x3f1   :  { %v545_v29 = vpop.f32.mrb[10].mxu0 }
 0x3f2   :  { %v549_v30 = vadd.f32 %v545_v29, %v1930_v11  ;;  %v1227_v32 = vpop.f32.mrb[11].mxu0 }
 0x3f4   :  { %1608 = vtanh.f32 %v549_v30 }
 0x3fe   :  { %v1609_v33 = vpop.eup %1608 }
 0x3ff   :  { %552 = vst [vmem:[#allocation12 + $0x20] sm:$0xff] %v1609_v33  ;;  %1261 = vmatmul.mubr.f32.vlgmr.msra.gmra.mrb[4].mxu1 %v1609_v33 }
 0x400   :  { %1546 = vmatpush3.bf16.msra.mxu1 %v1850_v12  ;;  %1330 = vmatprep.mubr.msk.f32.mxu1 %vm1743_vm0, %v1744_v1 }
 0x401   :  { %1547 = vmatprep.subr.bf16.mxu1 %v1742_v0 }
 0x404   :  { %1549 = vmatpush3.bf16.msra.mxu1 %v1853_v18 }
 0x405   :  { %1550 = vmatprep.subr.bf16.mxu1 %v1742_v0 }
 0x408   :  { %1552 = vmatpush3.bf16.msra.mxu1 %v1857_v25 }
 0x409   :  { %1553 = vmatprep.subr.bf16.mxu1 %v1742_v0 }
 0x40c   :  { %1555 = vmatpush3.bf16.msra.mxu1 %v1861_v31 }
 0x40d   :  { %1556 = vmatprep.subr.bf16.mxu1 %v1742_v0 }
 0x410   :  { %1558 = vmatpush3.bf16.msra.mxu1 %v1865_v37 }
 0x411   :  { %1559 = vmatprep.subr.bf16.mxu1 %v1742_v0 }
 0x414   :  { %1561 = vmatpush3.bf16.msra.mxu1 %v1869_v43 }
 0x415   :  { %1562 = vmatprep.subr.bf16.mxu1 %v1742_v0 }
 0x418   :  { %1564 = vmatpush3.bf16.msra.mxu1 %v1873_v47 }
 0x419   :  { %1565 = vmatprep.subr.bf16.mxu1 %v1742_v0 }
 0x41c   :  { %1567 = vmatpush3.bf16.msra.mxu1 %v1877_v50 }
 0x4d2   :  { %v621_v34 = vpop.f32.mrb[4].mxu1 }
 0x4d3   :  { %v625_v35 = vadd.f32 %v621_v34, %v1926_v5  ;;  %v1262_v36 = vpop.f32.mrb[5].mxu1 }
 0x4d5   :  { %1610 = vtanh.f32 %v625_v35 }
 0x4df   :  { %v1611_v38 = vpop.eup %1610 }
 0x4e0   :  { %628 = vst [vmem:[#allocation12 + $0x18] sm:$0xff] %v1611_v38  ;;  %1296 = vmatmul.mubr.f32.vlgmr.msra.gmra.mrb[12].mxu0 %v1611_v38 }
 0x4e1   :  { %1570 = vmatpush3.bf16.msra.mxu0 %v1850_v12  ;;  %1365 = vmatprep.mubr.msk.f32.mxu0 %vm1743_vm0, %v1744_v1 }
 0x4e2   :  { %1571 = vmatprep.subr.bf16.mxu0 %v1742_v0 }
 0x4e5   :  { %1573 = vmatpush3.bf16.msra.mxu0 %v1853_v18 }
 0x4e6   :  { %1574 = vmatprep.subr.bf16.mxu0 %v1742_v0 }
 0x4e9   :  { %1576 = vmatpush3.bf16.msra.mxu0 %v1857_v25 }
 0x4ea   :  { %1577 = vmatprep.subr.bf16.mxu0 %v1742_v0 }
 0x4ed   :  { %1579 = vmatpush3.bf16.msra.mxu0 %v1861_v31 }
 0x4ee   :  { %1580 = vmatprep.subr.bf16.mxu0 %v1742_v0 }
 0x4f1   :  { %1582 = vmatpush3.bf16.msra.mxu0 %v1865_v37 }
 0x4f2   :  { %1583 = vmatprep.subr.bf16.mxu0 %v1742_v0 }
 0x4f5   :  { %1585 = vmatpush3.bf16.msra.mxu0 %v1869_v43 }
 0x4f6   :  { %1586 = vmatprep.subr.bf16.mxu0 %v1742_v0 }
 0x4f9   :  { %1588 = vmatpush3.bf16.msra.mxu0 %v1873_v47 }
 0x4fa   :  { %1589 = vmatprep.subr.bf16.mxu0 %v1742_v0 }
 0x4fd   :  { %1591 = vmatpush3.bf16.msra.mxu0 %v1877_v50 }
 0x5b3   :  { %v697_v1 = vpop.f32.mrb[12].mxu0 }
 0x5b4   :  { %v701_v12 = vadd.f32 %v697_v1, %v1928_v7  ;;  %v1297_v18 = vpop.f32.mrb[13].mxu0 }
 0x5b6   :  { %1612 = vtanh.f32 %v701_v12 }
 0x5c0   :  { %v1613_v25 = vpop.eup %1612 }
 0x5c1   :  { %704 = vst [vmem:[#allocation12 + $0x10] sm:$0xff] %v1613_v25  ;;  %1331 = vmatmul.mubr.f32.vlgmr.msra.gmra.mrb[6].mxu1 %v1613_v25 }
 0x694   :  { %v773_v31 = vpop.f32.mrb[6].mxu1 }
 0x695   :  { %v777_v37 = vadd.f32 %v773_v31, %v1922_v61  ;;  %v1332_v39 = vpop.f32.mrb[7].mxu1 }
 0x697   :  { %1614 = vtanh.f32 %v777_v37 }
 0x6a1   :  { %v1615_v40 = vpop.eup %1614 }
 0x6a2   :  { %780 = vst [vmem:[#allocation12 + $0x8] sm:$0xff] %v1615_v40  ;;  %1366 = vmatmul.mubr.f32.vlgmr.msra.gmra.mrb[14].mxu0 %v1615_v40 }
 0x775   :  { %v848_v41 = vpop.f32.mrb[14].mxu0 }
 0x776   :  { %v852_v0 = vadd.f32 %v848_v41, %v1924_v63  ;;  %v1367_v42 = vpop.f32.mrb[15].mxu0 }
 0x778   :  { %1616 = vtanh.f32 %v852_v0 }
 0x782   :  { %v1617_v43 = vpop.eup %1616 }
 0x783   :  { %854 = vst [vmem:[#allocation12] sm:$0xff] %v1617_v43 }
 0x784   :  { %1717 = shalt.err (!%p1714_p8)
}
 0x785   :  { %s1718_s22 = scalar_lea.hbm %s2045_s5, 1024 }
 0x786   :  { %p1719_p9 = scmp.ne.s32.totalorder %s2045_s5, %s1718_s22  ;;  %p1722_p10 = scmp.lt.u32.totalorder %s1718_s22, %s2045_s5 }
 0x788   :  { %p1724_p11 = pnand %p1722_p10, %p1719_p9 }
 0x78a   :  { %1727 = shalt.err (!%p1724_p11)
}
 0x78b   :  { %871 = dma.vmem_to_hbm [thread:$0]  %s866_s17, 1024, %s2045_s5, [#allocation6], %s1738_s1, %s1738_s1, %s1739_s15  }
 0x78c   :  { %1734 = dma.done.wait [#allocation6], 1024  }
 0x78d   :  { %1735 = vsyncadd [#allocation6], 4294966272 }
 0x78e   :  { %875 = vsyncpa [#allocation5], 1 }
 0x78f   :  { %876 = vsyncpa [#allocation8], 1 }
 0x790   :  { %877 = vsyncpa [#allocation11], 1 }
 0x791   :  { %878 = vsyncpa [#allocation6], 1 }

</bundles_post_ra>
